<compile_context>
chip_gen: v7x
topology: tpu7x:2x2x1
jax: 0.10.0
libtpu: 0.0.40
codegen_flags: <defaults>
</compile_context>

<pallas_src>
import functools

import jax
import jax.numpy as jnp
from jax.experimental import pallas as pl
from jax.experimental.pallas import tpu as pltpu


# ----------------------------------------------------------------------------
# Kernels
# ----------------------------------------------------------------------------
def _crusher_kernel_flat(x_ref, off_ref, out_ref, *, num_particles):
    # Lane-dense path (E not a multiple of 128).
    #   x_ref:   (TB, E)      VMEM
    #   off_ref: (1,  P*E)    VMEM (resident across all grid steps)
    #   out_ref: (TB, P*E)    VMEM (lane-dense: P*E is a multiple of 128 here)
    # out[b, p*E + e] = x[b, e] + off[p*E + e]
    x = x_ref[...]                                    # (TB, E)
    rep = jnp.tile(x, (1, num_particles))             # (TB, P*E), p-major/e-minor
    out_ref[...] = rep + off_ref[...]                 # broadcast over sublanes


def _crusher_kernel_3d(x_ref, off_ref, out_ref):
    # Straightforward path (E already a multiple of 128 -> stores already dense).
    #   x_ref:   (TB, E)     VMEM
    #   off_ref: (1, P, E)   VMEM (resident)
    #   out_ref: (TB, P, E)  VMEM
    out_ref[...] = x_ref[...][:, None, :] + off_ref[...]


# ----------------------------------------------------------------------------
# Wrapper
# ----------------------------------------------------------------------------
def _pick_batch_tile(B, E, P, itemsize, budget_bytes=8 * 1024 * 1024):
    """Largest batch tile whose double-buffered tiles fit a conservative VMEM
    budget (safe on v7x's 32 MiB scoped default, with headroom)."""
    if B <= 8:
        return B
    per_row = (2 * E + 2 * P * E) * itemsize          # x + out, both 2x-buffered
    resident = P * E * itemsize                       # offsets, kept resident
    tb = max(8, (budget_bytes - resident) // per_row)
    tb = max(8, (int(tb) // 8) * 8)                   # multiple of 8 (sublanes)
    return int(min(B, tb))


def particle_crusher(x, off_sets, *, batch_tile=None):
    """x: (B, E), off_sets: (1, P, E)  ->  (B, P, E); dtype follows x."""
    B, E = x.shape
    one, P, E2 = off_sets.shape
    assert one == 1 and E == E2

    itemsize = jnp.dtype(x.dtype).itemsize
    TB = batch_tile if batch_tile is not None else _pick_batch_tile(B, E, P, itemsize)
    grid = (pl.cdiv(B, TB),)

    cost = pl.CostEstimate(
        flops=B * P * E,
        transcendentals=0,
        bytes_accessed=itemsize * (B * E + P * E + B * P * E),
    )
    cparams = pltpu.CompilerParams(
        # Batch axis is embarrassingly parallel -> shards across the 2 TCs on v7x.
        dimension_semantics=("parallel",),
    )

    if E % 128 == 0:
        # E already lane-dense: keep the natural (B, P, E) layout.
        out = pl.pallas_call(
            _crusher_kernel_3d,
            out_shape=jax.ShapeDtypeStruct((B, P, E), x.dtype),
            grid=grid,
            in_specs=[
                pl.BlockSpec((TB, E), lambda i: (i, 0)),
                pl.BlockSpec((1, P, E), lambda i: (0, 0, 0)),   # resident
            ],
            out_specs=pl.BlockSpec((TB, P, E), lambda i: (i, 0, 0)),
            compiler_params=cparams,
            cost_estimate=cost,
        )(x, off_sets)
        return out

    # Lane-dense flattened output path (e.g. E=32, P*E=256).
    PE = P * E
    off_flat = off_sets.reshape(1, PE)                # wrapper-side layout plumbing
    out_flat = pl.pallas_call(
        functools.partial(_crusher_kernel_flat, num_particles=P),
        out_shape=jax.ShapeDtypeStruct((B, PE), x.dtype),
        grid=grid,
        in_specs=[
            pl.BlockSpec((TB, E), lambda i: (i, 0)),
            pl.BlockSpec((1, PE), lambda i: (0, 0)),            # resident
        ],
        out_specs=pl.BlockSpec((TB, PE), lambda i: (i, 0)),
        compiler_params=cparams,
        cost_estimate=cost,
    )(x, off_flat)
    return out_flat.reshape(B, P, E)


# ----------------------------------------------------------------------------
# Demo / self-test
# ----------------------------------------------------------------------------
if __name__ == "__main__":
    batch_size = 2
    embedding_size = 32
    num_particles = 8

    key = jax.random.PRNGKey(0)
    kx, koff = jax.random.split(key)

    x = jax.random.normal(kx, (batch_size, embedding_size), dtype=jnp.float32)

    # nn.Parameter is zero-initialized in the module; use a deterministic
    # non-zero value here so the broadcast-add path is actually exercised.
    off_sets = 0.01 * jax.random.normal(
        koff, (1, num_particles, embedding_size), dtype=jnp.float32
    )

    out = particle_crusher(x, off_sets)
    out = jax.block_until_ready(out)

    # Reference in plain JAX (mirrors the PyTorch forward exactly).
    ref = x.reshape(batch_size, 1, embedding_size) + off_sets

    assert out.shape == (batch_size, num_particles, embedding_size), out.shape
    assert out.dtype == jnp.float32
    assert jnp.allclose(out, ref, atol=1e-6, rtol=1e-6), "mismatch vs reference"

    print("KERNEL_OK")
</pallas_src>

<mosaic_0001>
module attributes {stable_mosaic.version = 11 : i64} {
  func.func @_crusher_kernel_flat(%arg0: i32, %arg1: memref<2x32xf32, #tpu.memory_space<vmem>>, %arg2: memref<1x256xf32, #tpu.memory_space<vmem>>, %arg3: memref<2x256xf32, #tpu.memory_space<vmem>>) attributes {dimension_semantics = [#tpu.dimension_semantics<parallel>], iteration_bounds = array<i64: 1>, scalar_prefetch = 0 : i64, scratch_operands = 0 : i64, tpu.core_type = #tpu.core_type<tc>, window_params = [{transform_indices = @transform_0, window_bounds = array<i64: 2, 32>}, {pipeline_mode = #tpu.pipeline_mode<synchronous>, transform_indices = @transform_1, window_bounds = array<i64: 1, 256>}, {transform_indices = @transform_2, window_bounds = array<i64: 2, 256>}]} {
    %c0 = arith.constant 0 : index
    %c0_0 = arith.constant 0 : index
    %0 = vector.load %arg1[%c0, %c0_0] : memref<2x32xf32, #tpu.memory_space<vmem>>, vector<2x32xf32>
    %1 = tpu.concatenate %0, %0, %0, %0, %0, %0, %0, %0 in 1 : vector<2x32xf32>, vector<2x32xf32>, vector<2x32xf32>, vector<2x32xf32>, vector<2x32xf32>, vector<2x32xf32>, vector<2x32xf32>, vector<2x32xf32> -> vector<2x256xf32>
    %c0_1 = arith.constant 0 : index
    %c0_2 = arith.constant 0 : index
    %2 = vector.load %arg2[%c0_1, %c0_2] : memref<1x256xf32, #tpu.memory_space<vmem>>, vector<1x256xf32>
    %3 = vector.broadcast %2 : vector<1x256xf32> to vector<2x256xf32>
    %4 = arith.addf %1, %3 : vector<2x256xf32>
    %c0_3 = arith.constant 0 : index
    %c0_4 = arith.constant 0 : index
    %5 = vector.load %arg3[%c0_3, %c0_4] : memref<2x256xf32, #tpu.memory_space<vmem>>, vector<2x256xf32>
    tpu.vector_store %arg3[%c0_3, %c0_4], %4 {strides = array<i32>} : memref<2x256xf32, #tpu.memory_space<vmem>>, vector<2x256xf32>,
    return
  }
  func.func @transform_0(%arg0: i32) -> (i32, i32) {
    %c0_i32 = arith.constant 0 : i32
    %c0_i32_0 = arith.constant 0 : i32
    return %arg0, %c0_i32 : i32, i32
  }
  func.func @transform_1(%arg0: i32) -> (i32, i32) {
    %c0_i32 = arith.constant 0 : i32
    %c0_i32_0 = arith.constant 0 : i32
    %c0_i32_1 = arith.constant 0 : i32
    return %c0_i32, %c0_i32_0 : i32, i32
  }
  func.func @transform_2(%arg0: i32) -> (i32, i32) {
    %c0_i32 = arith.constant 0 : i32
    %c0_i32_0 = arith.constant 0 : i32
    return %arg0, %c0_i32 : i32, i32
  }
}

</mosaic_0001>

<bundles_post_ra>
// kernel: tpu_custom_call.1
= control target key start
LH: loop header
LB: loop body
LE: loop exit
PB: predicated region body
PF: predicated region fallthrough
CT: control target
= control target key end

     0   :  { %7 = vsyncpa [#allocation3], 0  ;;  %s183_s0 = inlined_call_operand.hbm [shape: f32[2,32], index: 0, kind: input, shape index: {}]   ;;  %s184_s1 = inlined_call_operand.vmem [shape: f32[1,256], index: 1, kind: input, shape index: {}]   ;;  %s185_s2 = inlined_call_operand.hbm [shape: f32[2,256], index: 2, kind: output, shape index: {}]  }
   0x1   :  { %8 = vsyncpa [#allocation4], 0  ;;  %s136_s9 = smov [#allocation2]   ;;  %s88_s13 = scalar_lea.hbm %s183_s0, 32 }
   0x2   :  { %s15_s10 = sshll.u32 %s136_s9, 4  ;;  %p89_p0 = scmp.ne.s32.totalorder %s183_s0, %s88_s13  ;;  %s16_s10 = int_to_ptr.vmem [resolvable:$true] %s15_s10 }
   0x3   :  { %p92_p1 = scmp.lt.u32.totalorder %s88_s13, %s183_s0 }
   0x5   :  { %p94_p2 = pnand %p92_p1, %p89_p0 }
   0x7   :  { %97 = shalt.err (!%p94_p2)
}
   0x8   :  { %s98_s18 = scalar_lea.vmem %s16_s10, 32  ;;  %p103_p4 = scmp.lt.s32.totalorder %s16_s10, %s16_s10 }
   0x9   :  { %p99_p3 = scmp.ne.s32.totalorder %s16_s10, %s98_s18  ;;  %p104_p5 = scmp.lt.s32.totalorder %s98_s18, %s98_s18 }
   0xb   :  { %p105_p6 = por %p104_p5, %p103_p4 }
   0xd   :  { %p106_p7 = pnand %p105_p6, %p99_p3 }
   0xf   :  { %109 = shalt.err (!%p106_p7)
}
  0x10   :  { %18 = dma.hbm_to_vmem [thread:$0]  %s183_s0, 32, %s16_s10, [#allocation3]  }
  0x11   :  { %132 = dma.done.wait [#allocation3], 32  }
  0x12   :  { %133 = vsyncadd [#allocation3], 4294967264  ;;  %v24_v0 = vld [vmem:[#allocation2] sm:$0x3]  ;;  %s137_s21 = smov 32   ;;  %s138_s22 = smov 96   ;;  %v43_v1 = vlaneseq }
  0x13   :  { %26 = vrot.lane.b32.xlu0 %v24_v0, %s137_s21  ;;  %32 = vrot.lane.b32.xlu1 %v24_v0, %s138_s22  ;;  %s139_s23 = smov 64   ;;  %v41_v6 = vld [vmem:[%s184_s1] sm:$0x3]  ;;  %vm35_vm0 = vcmask 261120   ;;  %vm37_vm1 = vcmask 523264   ;;  %vm39_vm2 = vcmask 785408  }
  0x14   :  { %v44_v2 = vshrl.u32 %v43_v1, 7  ;;  %s140_s0 = smov [#allocation5]  }
  0x15   :  { %s73_s26 = sshll.u32 %s140_s0, 4  ;;  %s74_s26 = int_to_ptr.vmem [resolvable:$true] %s73_s26 }
  0x16   :  { %v45_v3 = vsub.s32 0, %v44_v2  ;;  %v49_v4 = vsub.s32 1, %v44_v2  ;;  %s110_s27 = scalar_lea.vmem %s74_s26, 64  ;;  %p115_p9 = scmp.lt.s32.totalorder %s74_s26, %s74_s26 }
  0x17   :  { %29 = vrot.lane.b32.xlu0 %v24_v0, %s139_s23  ;;  %p111_p8 = scmp.ne.s32.totalorder %s74_s26, %s110_s27  ;;  %p116_p10 = scmp.lt.s32.totalorder %s110_s27, %s110_s27 }
  0x18   :  { %v46_v7 = vrot.slane %v41_v6, %v45_v3  ;;  %v50_v8 = vrot.slane %v41_v6, %v49_v4 }
  0x19   :  { %p117_p11 = por %p116_p10, %p115_p9 }
  0x1b   :  { %p118_p12 = pnand %p117_p11, %p111_p8 }
  0x85   :  { %v27_v5 = vpop.permute.xlu0 %26  ;;  %v33_v9 = vpop.permute.xlu1 %32 }
  0x86   :  { %v36_v10 = vsel %vm35_vm0, %v24_v0, %v27_v5 }
  0x89   :  { %v30_v11 = vpop.permute.xlu0 %29 }
  0x8a   :  { %v38_v12 = vsel %vm37_vm1, %v36_v10, %v30_v11 }
  0x8b   :  { %v40_v13 = vsel %vm39_vm2, %v38_v12, %v33_v9 }
  0x8c   :  { %v53_v14 = vadd.f32 %v46_v7, %v40_v13  ;;  %v54_v15 = vadd.f32 %v50_v8, %v40_v13 }
  0x8e   :  { %v57_v16 = vcombine.low %v53_v14, %v54_v15 }
  0x90   :  { %82 = vst.sshfl [vmem:[#allocation5] sm:$0x33 pattern:$0x76325410] %v57_v16 }
  0x91   :  { %121 = shalt.err (!%p118_p12)
}
  0x92   :  { %s122_s29 = scalar_lea.hbm %s185_s2, 64 }
  0x93   :  { %p123_p13 = scmp.ne.s32.totalorder %s185_s2, %s122_s29  ;;  %p126_p0 = scmp.lt.u32.totalorder %s122_s29, %s185_s2 }
  0x95   :  { %p128_p1 = pnand %p126_p0, %p123_p13 }
  0x97   :  { %131 = shalt.err (!%p128_p1)
}
  0x98   :  { %76 = dma.vmem_to_hbm [thread:$0]  %s74_s26, 64, %s185_s2, [#allocation4]  }
  0x99   :  { %134 = dma.done.wait [#allocation4], 64  }
  0x9a   :  { %135 = vsyncadd [#allocation4], 4294967232 }
  0x9b   :  { %80 = vsyncpa [#allocation3], 1 }
  0x9c   :  { %81 = vsyncpa [#allocation4], 1 }

</bundles_post_ra>
